<compile_context>
chip_gen: v7x
topology: tpu7x:2x2x1
jax: 0.10.0
libtpu: 0.0.40
codegen_flags: <defaults>
</compile_context>

<pallas_src>
import functools

import jax
import jax.numpy as jnp
import numpy as np
from jax.experimental import pallas as pl
from jax.experimental.pallas import tpu as pltpu

_EPS = 1e-5


# ----------------------------- Pallas kernel ------------------------------- #

def _basic_block_kernel(x_ref,
                        b1sc_ref, s1_ref, c1_ref, ssc_ref, csc_ref,
                        b2_ref, s2_ref, c2_ref,
                        out_ref, *, ho, pregathered):
    """One batch-block (B_BLK images) per grid step; everything stays in VMEM.

    x_ref    : (B_BLK, Hp, Wp*Cin)         padded input, (W, Cin) flattened onto lanes
               or (B_BLK, kh, Ho, Wp*Cin)  pre-gathered strided row windows (stride > 1)
    b1sc_ref : (kh, Wp*Cin, 2*Wo*Cout)     banded weights for [conv1 | shortcut]
    b2_ref   : (3*Wo*Cout, Wo*Cout)        merged banded weight for the (3,1) conv
    s*/c*    : (1, Wo*Cout)                folded BN scale / bias (tiled over Wo)
    out_ref  : (B_BLK, Ho, Wo*Cout)        lane-dense output block
    """
    bblk, _, wc = out_ref.shape
    kh = b1sc_ref.shape[0]
    m = bblk * ho

    xv = x_ref[...]

    # --- conv1 and shortcut conv share input rows: one K=Wp*Cin matmul per kh tap ---
    # MXU LHS is (B_BLK*Ho, K): all images of the block stacked along M.
    acc = None
    for dh in range(kh):                                   # static unroll (kh taps)
        rows = xv[:, dh] if pregathered else xv[:, dh:dh + ho]   # (B_BLK, Ho, K)
        rows = rows.reshape(m, rows.shape[-1])
        part = jnp.dot(rows, b1sc_ref[dh], preferred_element_type=jnp.float32)
        acc = part if acc is None else acc + part          # seed with first tap's dot

    y = jnp.maximum(acc[:, :wc] * s1_ref[...] + c1_ref[...], 0.0)   # layer1: BN + ReLU
    identity = acc[:, wc:] * ssc_ref[...] + csc_ref[...]            # shortcut: BN

    # --- layer2: (3,1) conv, stride 1, pad (1,0), as ONE K=3*Wo*Cout matmul ---
    # Zero-pad y along H per image (value-level, no scratch), take the three H-shifted
    # windows and concatenate them on the lane axis (offsets 0/wc/2wc are 128-aligned).
    y3 = y.reshape(bblk, ho, wc)
    zrow = jnp.zeros((bblk, 1, wc), jnp.float32)
    ypad = jnp.concatenate([zrow, y3, zrow], axis=1)                 # (B_BLK, Ho+2, wc)
    lhs2 = jnp.concatenate(
        [ypad[:, 0:ho], ypad[:, 1:ho + 1], ypad[:, 2:ho + 2]], axis=-1
    ).reshape(m, 3 * wc)
    y2 = jnp.dot(lhs2, b2_ref[...], preferred_element_type=jnp.float32)
    y2 = y2 * s2_ref[...] + c2_ref[...]

    out_ref[...] = jnp.maximum(y2 + identity, 0.0).reshape(bblk, ho, wc).astype(out_ref.dtype)


# ------------------------------ JAX wrappers ------------------------------- #

def _band_weights(w_oihw, w_in, n_wout, sw):
    """Fold (kw, Cin) into the contraction: (kh, w_in*Cin, n_wout*Cout) banded matrix.

    band[dh][(w_out*sw + dw)*Cin + ci, w_out*Cout + co] = W[co, ci, dh, dw]
    """
    cout, cin, kh, kw = w_oihw.shape
    w_hwio = jnp.transpose(w_oihw, (2, 3, 1, 0))             # (kh, kw, cin, cout)
    rows = ((jnp.arange(n_wout)[:, None] * sw + jnp.arange(kw)[None, :])[:, :, None] * cin
            + jnp.arange(cin)[None, None, :])                # (wo, kw, cin)
    cols = jnp.arange(n_wout)[:, None] * cout + jnp.arange(cout)[None, :]   # (wo, cout)
    bands = []
    for dh in range(kh):
        b = jnp.zeros((w_in * cin, n_wout * cout), w_oihw.dtype)
        b = b.at[rows[:, :, :, None], cols[:, None, None, :]].set(
            jnp.broadcast_to(w_hwio[dh][None], (n_wout, kw, cin, cout)))
        bands.append(b)
    return jnp.stack(bands)


def _fold_bn(bn, n_wout):
    """Inference BN folded to scale/bias, tiled to the (Wo*Cout) lane layout."""
    scale = bn["gamma"] / jnp.sqrt(bn["var"] + _EPS)
    bias = bn["beta"] - bn["mean"] * scale
    return jnp.tile(scale, n_wout)[None, :], jnp.tile(bias, n_wout)[None, :]


def _pick_batch_block(n, ho, target_m=256):
    """Largest divisor of n with B_BLK*Ho <= target_m, keeping >= 2 grid steps when possible."""
    target = max(1, target_m // max(ho, 1))
    best = 1
    for d in range(1, n + 1):
        if n % d == 0 and d <= target:
            best = d
    while best > 1 and n // best < 2:          # keep 2 TCs busy on v7x if batch allows
        nxt = 1
        for d in range(1, best):
            if n % d == 0:
                nxt = d
        best = nxt
    return best


@functools.partial(jax.jit, static_argnames=("stride", "padding"))
def basic_block_forward(params, x_nchw, stride, padding):
    """Pallas implementation of BasicBlock.forward (input/output NCHW, float32).

    NOTE: when chaining several Pallas blocks, keep the flattened (N, H, W*C) activation
    layout between them and drop the NCHW transposes / pad / reshapes below — for this
    mem-light kernel those two XLA layout passes are full extra HBM round-trips.
    """
    n, cin, h, w = x_nchw.shape
    cout, _, kh, kw = params["w1"].shape
    sh, sw = stride
    ph, pw = padding
    ho = (h + 2 * ph - kh) // sh + 1
    wo = (w + 2 * pw - kw) // sw + 1
    hp, wp = h + 2 * ph, w + 2 * pw
    wc = wo * cout
    kdim = wp * cin

    # NCHW -> NHWC, pad once, flatten (W, Cin) onto the lane axis (all fused under jit).
    x = jnp.transpose(x_nchw, (0, 2, 3, 1))
    x = jnp.pad(x, ((0, 0), (ph, ph), (pw, pw), (0, 0)))
    x_flat = x.reshape(n, hp, kdim)

    bblk = _pick_batch_block(n, ho)
    pregathered = sh != 1
    if pregathered:
        # Pre-gather the kh strided H-windows in XLA so in-kernel slices are contiguous.
        taps = [x_flat[:, dh:dh + sh * (ho - 1) + 1:sh, :] for dh in range(kh)]
        x_in = jnp.stack(taps, axis=1)                        # (n, kh, ho, kdim)
        x_spec = pl.BlockSpec((bblk, kh, ho, kdim), lambda b: (b, 0, 0, 0))
    else:
        x_in = x_flat                                         # (n, hp, kdim)
        x_spec = pl.BlockSpec((bblk, hp, kdim), lambda b: (b, 0, 0))

    # Banded weights (conv1 and shortcut concatenated -> one matmul per tap for both);
    # conv2's three taps merged into a single (3*wc, wc) band -> one K=3*wc matmul.
    b1 = _band_weights(params["w1"], wp, wo, sw)
    bsc = _band_weights(params["w_sc"], wp, wo, sw)
    b1sc = jnp.concatenate([b1, bsc], axis=2)                 # (kh, wp*cin, 2*wc)
    b2_taps = _band_weights(params["w2"], wo, wo, 1)          # (3, wc, wc)
    b2 = jnp.concatenate([b2_taps[i] for i in range(3)], axis=0)   # (3*wc, wc)

    s1, c1 = _fold_bn(params["bn1"], wo)
    ssc, csc = _fold_bn(params["bn_sc"], wo)
    s2, c2 = _fold_bn(params["bn2"], wo)

    # Real conv MACs (conv1 + shortcut + conv2), not the mostly-zero banded dims.
    flops = (2 * n * ho * wo * cout * (kh * kw * cin)) * 2 \
            + 2 * n * ho * wo * cout * (3 * 1 * cout)
    bytes_accessed = 4 * (x_in.size + b1sc.size + b2.size + 6 * wc + n * ho * wc)

    def full(shp):
        return pl.BlockSpec(shp, lambda b, _n=len(shp): (0,) * _n)

    grid_spec = pltpu.PrefetchScalarGridSpec(
        num_scalar_prefetch=0,
        grid=(n // bblk,),
        in_specs=[
            x_spec,
            full(b1sc.shape), full(s1.shape), full(c1.shape),
            full(ssc.shape), full(csc.shape),
            full(b2.shape), full(s2.shape), full(c2.shape),
        ],
        out_specs=pl.BlockSpec((bblk, ho, wc), lambda b: (b, 0, 0)),
    )

    out = pl.pallas_call(
        functools.partial(_basic_block_kernel, ho=ho, pregathered=pregathered),
        out_shape=jax.ShapeDtypeStruct((n, ho, wc), x_nchw.dtype),
        grid_spec=grid_spec,
        compiler_params=pltpu.CompilerParams(
            dimension_semantics=("parallel",),
            vmem_limit_bytes=48 * 1024 * 1024,
        ),
        cost_estimate=pl.CostEstimate(flops=flops, transcendentals=0,
                                      bytes_accessed=bytes_accessed),
    )(x_in, b1sc, s1, c1, ssc, csc, b2, s2, c2)

    out = out.reshape(n, ho, wo, cout)                        # un-flatten (W, Cout)
    return jnp.transpose(out, (0, 3, 1, 2))                   # NHWC -> NCHW


# -------------------------- deterministic init ----------------------------- #

def init_basic_block_params(key, cin, cout, kernel_size):
    kh, kw = kernel_size
    keys = jax.random.split(key, 15)

    def conv_w(k, o, i, khh, kww):
        bound = 1.0 / np.sqrt(i * khh * kww)
        return jax.random.uniform(k, (o, i, khh, kww), jnp.float32, -bound, bound)

    def bn_params(kg, kb, km, kv, c):
        return {
            "gamma": jax.random.uniform(kg, (c,), jnp.float32, 0.5, 1.5),
            "beta":  jax.random.uniform(kb, (c,), jnp.float32, -0.5, 0.5),
            "mean":  0.1 * jax.random.normal(km, (c,), jnp.float32),
            "var":   jax.random.uniform(kv, (c,), jnp.float32, 0.5, 1.5),
        }

    return {
        "w1":   conv_w(keys[0], cout, cin, kh, kw),
        "bn1":  bn_params(keys[1], keys[2], keys[3], keys[4], cout),
        "w2":   conv_w(keys[5], cout, cout, 3, 1),
        "bn2":  bn_params(keys[6], keys[7], keys[8], keys[9], cout),
        "w_sc": conv_w(keys[10], cout, cin, kh, kw),
        "bn_sc": bn_params(keys[11], keys[12], keys[13], keys[14], cout),
    }


# ----------------------- pure-JAX reference (check) ------------------------ #

def _ref_conv_bn(x, w, bn, stride, padding, relu):
    y = jax.lax.conv_general_dilated(
        x, w, window_strides=stride,
        padding=[(padding[0], padding[0]), (padding[1], padding[1])],
        dimension_numbers=("NCHW", "OIHW", "NCHW"))
    scale = bn["gamma"] / jnp.sqrt(bn["var"] + _EPS)
    bias = bn["beta"] - bn["mean"] * scale
    y = y * scale[None, :, None, None] + bias[None, :, None, None]
    return jnp.maximum(y, 0.0) if relu else y


def basic_block_ref(params, x, stride, padding):
    identity = _ref_conv_bn(x, params["w_sc"], params["bn_sc"], stride, padding, False)
    y = _ref_conv_bn(x, params["w1"], params["bn1"], stride, padding, True)
    y = _ref_conv_bn(y, params["w2"], params["bn2"], (1, 1), (1, 0), False)
    return jnp.maximum(y + identity, 0.0)


# ---------------------------------- main ----------------------------------- #

if __name__ == "__main__":
    key = jax.random.PRNGKey(0)
    kx, kp = jax.random.split(key)

    # BasicBlock(input_channel=4, output_channel=8, kernel_size=3, stride=1, padding=1)
    cin, cout = 4, 8
    kernel_size, stride, padding = (3, 3), (1, 1), (1, 1)

    x = jax.random.normal(kx, (2, cin, 16, 16), jnp.float32)          # NCHW
    params = init_basic_block_params(kp, cin, cout, kernel_size)

    out = basic_block_forward(params, x, stride=stride, padding=padding)
    out = jax.block_until_ready(out)

    ref = basic_block_ref(params, x, stride, padding)
    np.testing.assert_allclose(np.asarray(out), np.asarray(ref), rtol=2e-4, atol=2e-4)

    print("KERNEL_OK")
</pallas_src>

<mosaic_0001>
module attributes {stable_mosaic.version = 11 : i64} {
  func.func @_basic_block_kernel(%arg0: i32, %arg1: memref<1x18x72xf32, #tpu.memory_space<vmem>>, %arg2: memref<3x72x256xf32, #tpu.memory_space<vmem>>, %arg3: memref<1x128xf32, #tpu.memory_space<vmem>>, %arg4: memref<1x128xf32, #tpu.memory_space<vmem>>, %arg5: memref<1x128xf32, #tpu.memory_space<vmem>>, %arg6: memref<1x128xf32, #tpu.memory_space<vmem>>, %arg7: memref<384x128xf32, #tpu.memory_space<vmem>>, %arg8: memref<1x128xf32, #tpu.memory_space<vmem>>, %arg9: memref<1x128xf32, #tpu.memory_space<vmem>>, %arg10: memref<1x16x128xf32, #tpu.memory_space<vmem>>) attributes {dimension_semantics = [#tpu.dimension_semantics<parallel>], iteration_bounds = array<i64: 2>, scalar_prefetch = 0 : i64, scratch_operands = 0 : i64, tpu.core_type = #tpu.core_type<tc>, window_params = [{transform_indices = @transform_0, window_bounds = array<i64: 1, 18, 72>}, {pipeline_mode = #tpu.pipeline_mode<synchronous>, transform_indices = @transform_1, window_bounds = array<i64: 3, 72, 256>}, {pipeline_mode = #tpu.pipeline_mode<synchronous>, transform_indices = @transform_2, window_bounds = array<i64: 1, 128>}, {pipeline_mode = #tpu.pipeline_mode<synchronous>, transform_indices = @transform_3, window_bounds = array<i64: 1, 128>}, {pipeline_mode = #tpu.pipeline_mode<synchronous>, transform_indices = @transform_4, window_bounds = array<i64: 1, 128>}, {pipeline_mode = #tpu.pipeline_mode<synchronous>, transform_indices = @transform_5, window_bounds = array<i64: 1, 128>}, {pipeline_mode = #tpu.pipeline_mode<synchronous>, transform_indices = @transform_6, window_bounds = array<i64: 384, 128>}, {pipeline_mode = #tpu.pipeline_mode<synchronous>, transform_indices = @transform_7, window_bounds = array<i64: 1, 128>}, {pipeline_mode = #tpu.pipeline_mode<synchronous>, transform_indices = @transform_8, window_bounds = array<i64: 1, 128>}, {transform_indices = @transform_9, window_bounds = array<i64: 1, 16, 128>}]} {
    %c0 = arith.constant 0 : index
    %c0_0 = arith.constant 0 : index
    %c0_1 = arith.constant 0 : index
    %0 = vector.load %arg1[%c0, %c0_0, %c0_1] : memref<1x18x72xf32, #tpu.memory_space<vmem>>, vector<1x18x72xf32>
    %1 = vector.extract_strided_slice %0 {offsets = [0, 0, 0], sizes = [1, 16, 72], strides = [1, 1, 1]} : vector<1x18x72xf32> to vector<1x16x72xf32>
    %2 = vector.shape_cast %1 : vector<1x16x72xf32> to vector<16x72xf32>
    %c0_2 = arith.constant 0 : index
    %c0_3 = arith.constant 0 : index
    %c0_4 = arith.constant 0 : index
    %3 = vector.load %arg2[%c0_2, %c0_3, %c0_4] : memref<3x72x256xf32, #tpu.memory_space<vmem>>, vector<1x72x256xf32>
    %4 = vector.shape_cast %3 : vector<1x72x256xf32> to vector<72x256xf32>
    %cst = arith.constant dense<0.000000e+00> : vector<16x256xf32>
    %5 = tpu.matmul %2, %4, %cst {dimension_numbers = #tpu.dot_dimension_numbers<[1], [0], [0], [1], [0, 0, 1, 1], [], []>} : vector<16x72xf32>, vector<72x256xf32>, vector<16x256xf32> -> vector<16x256xf32>
    %6 = vector.extract_strided_slice %0 {offsets = [0, 1, 0], sizes = [1, 16, 72], strides = [1, 1, 1]} : vector<1x18x72xf32> to vector<1x16x72xf32>
    %7 = vector.shape_cast %6 : vector<1x16x72xf32> to vector<16x72xf32>
    %c1 = arith.constant 1 : index
    %c0_5 = arith.constant 0 : index
    %c0_6 = arith.constant 0 : index
    %8 = vector.load %arg2[%c1, %c0_5, %c0_6] : memref<3x72x256xf32, #tpu.memory_space<vmem>>, vector<1x72x256xf32>
    %9 = vector.shape_cast %8 : vector<1x72x256xf32> to vector<72x256xf32>
    %cst_7 = arith.constant dense<0.000000e+00> : vector<16x256xf32>
    %10 = tpu.matmul %7, %9, %cst_7 {dimension_numbers = #tpu.dot_dimension_numbers<[1], [0], [0], [1], [0, 0, 1, 1], [], []>} : vector<16x72xf32>, vector<72x256xf32>, vector<16x256xf32> -> vector<16x256xf32>
    %11 = arith.addf %5, %10 : vector<16x256xf32>
    %12 = vector.extract_strided_slice %0 {offsets = [0, 2, 0], sizes = [1, 16, 72], strides = [1, 1, 1]} : vector<1x18x72xf32> to vector<1x16x72xf32>
    %13 = vector.shape_cast %12 : vector<1x16x72xf32> to vector<16x72xf32>
    %c2 = arith.constant 2 : index
    %c0_8 = arith.constant 0 : index
    %c0_9 = arith.constant 0 : index
    %14 = vector.load %arg2[%c2, %c0_8, %c0_9] : memref<3x72x256xf32, #tpu.memory_space<vmem>>, vector<1x72x256xf32>
    %15 = vector.shape_cast %14 : vector<1x72x256xf32> to vector<72x256xf32>
    %cst_10 = arith.constant dense<0.000000e+00> : vector<16x256xf32>
    %16 = tpu.matmul %13, %15, %cst_10 {dimension_numbers = #tpu.dot_dimension_numbers<[1], [0], [0], [1], [0, 0, 1, 1], [], []>} : vector<16x72xf32>, vector<72x256xf32>, vector<16x256xf32> -> vector<16x256xf32>
    %17 = arith.addf %11, %16 : vector<16x256xf32>
    %18 = vector.extract_strided_slice %17 {offsets = [0, 0], sizes = [16, 128], strides = [1, 1]} : vector<16x256xf32> to vector<16x128xf32>
    %c0_11 = arith.constant 0 : index
    %c0_12 = arith.constant 0 : index
    %19 = vector.load %arg3[%c0_11, %c0_12] : memref<1x128xf32, #tpu.memory_space<vmem>>, vector<1x128xf32>
    %20 = vector.broadcast %19 : vector<1x128xf32> to vector<16x128xf32>
    %21 = arith.mulf %18, %20 : vector<16x128xf32>
    %c0_13 = arith.constant 0 : index
    %c0_14 = arith.constant 0 : index
    %22 = vector.load %arg4[%c0_13, %c0_14] : memref<1x128xf32, #tpu.memory_space<vmem>>, vector<1x128xf32>
    %23 = vector.broadcast %22 : vector<1x128xf32> to vector<16x128xf32>
    %24 = arith.addf %21, %23 : vector<16x128xf32>
    %cst_15 = arith.constant 0.000000e+00 : f32
    %25 = vector.broadcast %cst_15 : f32 to vector<16x128xf32>
    %26 = arith.maximumf %24, %25 : vector<16x128xf32>
    %27 = vector.extract_strided_slice %17 {offsets = [0, 128], sizes = [16, 128], strides = [1, 1]} : vector<16x256xf32> to vector<16x128xf32>
    %c0_16 = arith.constant 0 : index
    %c0_17 = arith.constant 0 : index
    %28 = vector.load %arg5[%c0_16, %c0_17] : memref<1x128xf32, #tpu.memory_space<vmem>>, vector<1x128xf32>
    %29 = vector.broadcast %28 : vector<1x128xf32> to vector<16x128xf32>
    %30 = arith.mulf %27, %29 : vector<16x128xf32>
    %c0_18 = arith.constant 0 : index
    %c0_19 = arith.constant 0 : index
    %31 = vector.load %arg6[%c0_18, %c0_19] : memref<1x128xf32, #tpu.memory_space<vmem>>, vector<1x128xf32>
    %32 = vector.broadcast %31 : vector<1x128xf32> to vector<16x128xf32>
    %33 = arith.addf %30, %32 : vector<16x128xf32>
    %34 = vector.shape_cast %26 : vector<16x128xf32> to vector<1x16x128xf32>
    %cst_20 = arith.constant 0.000000e+00 : f32
    %35 = vector.broadcast %cst_20 : f32 to vector<1x1x128xf32>
    %36 = tpu.concatenate %35, %34, %35 in 1 : vector<1x1x128xf32>, vector<1x16x128xf32>, vector<1x1x128xf32> -> vector<1x18x128xf32>
    %37 = vector.extract_strided_slice %36 {offsets = [0, 0, 0], sizes = [1, 16, 128], strides = [1, 1, 1]} : vector<1x18x128xf32> to vector<1x16x128xf32>
    %38 = vector.extract_strided_slice %36 {offsets = [0, 1, 0], sizes = [1, 16, 128], strides = [1, 1, 1]} : vector<1x18x128xf32> to vector<1x16x128xf32>
    %39 = vector.extract_strided_slice %36 {offsets = [0, 2, 0], sizes = [1, 16, 128], strides = [1, 1, 1]} : vector<1x18x128xf32> to vector<1x16x128xf32>
    %40 = tpu.concatenate %37, %38, %39 in 2 : vector<1x16x128xf32>, vector<1x16x128xf32>, vector<1x16x128xf32> -> vector<1x16x384xf32>
    %41 = vector.shape_cast %40 : vector<1x16x384xf32> to vector<16x384xf32>
    %c0_21 = arith.constant 0 : index
    %c0_22 = arith.constant 0 : index
    %42 = vector.load %arg7[%c0_21, %c0_22] : memref<384x128xf32, #tpu.memory_space<vmem>>, vector<384x128xf32>
    %cst_23 = arith.constant dense<0.000000e+00> : vector<16x128xf32>
    %43 = tpu.matmul %41, %42, %cst_23 {dimension_numbers = #tpu.dot_dimension_numbers<[1], [0], [0], [1], [0, 0, 1, 1], [], []>} : vector<16x384xf32>, vector<384x128xf32>, vector<16x128xf32> -> vector<16x128xf32>
    %c0_24 = arith.constant 0 : index
    %c0_25 = arith.constant 0 : index
    %44 = vector.load %arg8[%c0_24, %c0_25] : memref<1x128xf32, #tpu.memory_space<vmem>>, vector<1x128xf32>
    %45 = vector.broadcast %44 : vector<1x128xf32> to vector<16x128xf32>
    %46 = arith.mulf %43, %45 : vector<16x128xf32>
    %c0_26 = arith.constant 0 : index
    %c0_27 = arith.constant 0 : index
    %47 = vector.load %arg9[%c0_26, %c0_27] : memref<1x128xf32, #tpu.memory_space<vmem>>, vector<1x128xf32>
    %48 = vector.broadcast %47 : vector<1x128xf32> to vector<16x128xf32>
    %49 = arith.addf %46, %48 : vector<16x128xf32>
    %50 = arith.addf %49, %33 : vector<16x128xf32>
    %cst_28 = arith.constant 0.000000e+00 : f32
    %51 = vector.broadcast %cst_28 : f32 to vector<16x128xf32>
    %52 = arith.maximumf %50, %51 : vector<16x128xf32>
    %53 = vector.shape_cast %52 : vector<16x128xf32> to vector<1x16x128xf32>
    %c0_29 = arith.constant 0 : index
    %c0_30 = arith.constant 0 : index
    %c0_31 = arith.constant 0 : index
    %54 = vector.load %arg10[%c0_29, %c0_30, %c0_31] : memref<1x16x128xf32, #tpu.memory_space<vmem>>, vector<1x16x128xf32>
    tpu.vector_store %arg10[%c0_29, %c0_30, %c0_31], %53 {strides = array<i32>} : memref<1x16x128xf32, #tpu.memory_space<vmem>>, vector<1x16x128xf32>,
    return
  }
  func.func @transform_0(%arg0: i32) -> (i32, i32, i32) {
    %c0_i32 = arith.constant 0 : i32
    %c0_i32_0 = arith.constant 0 : i32
    %c0_i32_1 = arith.constant 0 : i32
    return %arg0, %c0_i32, %c0_i32_0 : i32, i32, i32
  }
  func.func @transform_1(%arg0: i32) -> (i32, i32, i32) {
    %c0_i32 = arith.constant 0 : i32
    %c0_i32_0 = arith.constant 0 : i32
    %c0_i32_1 = arith.constant 0 : i32
    %c0_i32_2 = arith.constant 0 : i32
    return %c0_i32, %c0_i32_0, %c0_i32_1 : i32, i32, i32
  }
  func.func @transform_2(%arg0: i32) -> (i32, i32) {
    %c0_i32 = arith.constant 0 : i32
    %c0_i32_0 = arith.constant 0 : i32
    %c0_i32_1 = arith.constant 0 : i32
    return %c0_i32, %c0_i32_0 : i32, i32
  }
  func.func @transform_3(%arg0: i32) -> (i32, i32) {
    %c0_i32 = arith.constant 0 : i32
    %c0_i32_0 = arith.constant 0 : i32
    %c0_i32_1 = arith.constant 0 : i32
    return %c0_i32, %c0_i32_0 : i32, i32
  }
  func.func @transform_4(%arg0: i32) -> (i32, i32) {
    %c0_i32 = arith.constant 0 : i32
    %c0_i32_0 = arith.constant 0 : i32
    %c0_i32_1 = arith.constant 0 : i32
    return %c0_i32, %c0_i32_0 : i32, i32
  }
  func.func @transform_5(%arg0: i32) -> (i32, i32) {
    %c0_i32 = arith.constant 0 : i32
    %c0_i32_0 = arith.constant 0 : i32
    %c0_i32_1 = arith.constant 0 : i32
    return %c0_i32, %c0_i32_0 : i32, i32
  }
  func.func @transform_6(%arg0: i32) -> (i32, i32) {
    %c0_i32 = arith.constant 0 : i32
    %c0_i32_0 = arith.constant 0 : i32
    %c0_i32_1 = arith.constant 0 : i32
    return %c0_i32, %c0_i32_0 : i32, i32
  }
  func.func @transform_7(%arg0: i32) -> (i32, i32) {
    %c0_i32 = arith.constant 0 : i32
    %c0_i32_0 = arith.constant 0 : i32
    %c0_i32_1 = arith.constant 0 : i32
    return %c0_i32, %c0_i32_0 : i32, i32
  }
  func.func @transform_8(%arg0: i32) -> (i32, i32) {
    %c0_i32 = arith.constant 0 : i32
    %c0_i32_0 = arith.constant 0 : i32
    %c0_i32_1 = arith.constant 0 : i32
    return %c0_i32, %c0_i32_0 : i32, i32
  }
  func.func @transform_9(%arg0: i32) -> (i32, i32, i32) {
    %c0_i32 = arith.constant 0 : i32
    %c0_i32_0 = arith.constant 0 : i32
    %c0_i32_1 = arith.constant 0 : i32
    return %arg0, %c0_i32, %c0_i32_0 : i32, i32, i32
  }
}

</mosaic_0001>

<bundles_post_ra>
// kernel: tile.33
= control target key start
LH: loop header
LB: loop body
LE: loop exit
PB: predicated region body
PF: predicated region fallthrough
CT: control target
= control target key end

     0   :  { %s28_s0 = inlined_call_operand.vmem [shape: f32[8], index: 0, kind: input, shape index: {}]   ;;  %s29_s1 = inlined_call_operand.vmem [shape: f32[16,8], index: 1, kind: output, shape index: {}]  }
   0x1   :  { %v4_v0 = vld [vmem:[%s28_s0] ss:$0 sm:$0xff] }
   0x2   :  { %5 = vst [vmem:[%s29_s1] sm:$0xff] %v4_v0  ;;  %8 = vst [vmem:[%s29_s1 + $0x8] sm:$0xff] %v4_v0 }

// kernel: tile.34
= control target key start
LH: loop header
LB: loop body
LE: loop exit
PB: predicated region body
PF: predicated region fallthrough
CT: control target
= control target key end

     0   :  { %s131_s10 = smov 120   ;;  %s132_s11 = smov 104   ;;  %vm3_vm0 = vcmask 64512   ;;  %vm9_vm1 = vcmask 1048512   ;;  %vm15_vm2 = vcmask 982912   ;;  %vm21_vm3 = vcmask 917312   ;;  %s207_s0 = inlined_call_operand.vmem [shape: f32[16,8], index: 0, kind: input, shape index: {}]   ;;  %s208_s1 = inlined_call_operand.vmem [shape: f32[1,128], index: 1, kind: output, shape index: {}]  }
   0x1   :  { %v101_v0 = vld [vmem:[%s207_s0 + $0xf] sm:$0x1]   ;;  %v103_v1 = vld [vmem:[%s207_s0 + $0xd] sm:$0x1]   ;;  %v102_v2 = vld [vmem:[%s207_s0 + $0xe] sm:$0x1]  }
   0x2   :  { %7 = vrot.lane.b32.xlu0 %v101_v0, %s131_s10  ;;  %19 = vrot.lane.b32.xlu1 %v103_v1, %s132_s11  ;;  %v104_v3 = vld [vmem:[%s207_s0 + $0xc] sm:$0x1]   ;;  %s133_s16 = smov 112   ;;  %s134_s17 = smov 96   ;;  %v105_v4 = vld [vmem:[%s207_s0 + $0xb] sm:$0x1]  }
   0x3   :  { %v106_v5 = vld [vmem:[%s207_s0 + $0xa] sm:$0x1]   ;;  %v2_v6 = vld [vmem:[%s207_s0] sm:$0x1]   ;;  %s135_s24 = smov 88   ;;  %s136_s25 = smov 80  }
   0x4   :  { %4 = vst.msk [vmem:[#allocation0] sm:$0x1] %vm3_vm0, %v2_v6   ;;  %v107_v7 = vld [vmem:[%s207_s0 + $0x9] sm:$0x1]   ;;  %v108_v8 = vld [vmem:[%s207_s0 + $0x8] sm:$0x1]  }
   0x5   :  { %s137_s30 = smov 72   ;;  %s138_s2 = smov 64   ;;  %v109_v9 = vld [vmem:[%s207_s0 + $0x7] sm:$0x1]   ;;  %v110_v10 = vld [vmem:[%s207_s0 + $0x6] sm:$0x1]  }
   0x6   :  { %13 = vrot.lane.b32.xlu0 %v102_v2, %s133_s16  ;;  %25 = vrot.lane.b32.xlu1 %v104_v3, %s134_s17  ;;  %s139_s7 = smov 56   ;;  %s140_s8 = smov 48   ;;  %v111_v11 = vld [vmem:[%s207_s0 + $0x5] sm:$0x1]   ;;  %v112_v12 = vld [vmem:[%s207_s0 + $0x4] sm:$0x1]  }
   0x7   :  { %s141_s13 = smov 40   ;;  %s142_s14 = smov 32   ;;  %v113_v13 = vld [vmem:[%s207_s0 + $0x3] sm:$0x1]   ;;  %v114_v14 = vld [vmem:[%s207_s0 + $0x2] sm:$0x1]  }
   0x8   :  { %s143_s19 = smov 24   ;;  %s144_s20 = smov 16   ;;  %v115_v15 = vld [vmem:[%s207_s0 + $0x1] sm:$0x1]   ;;  %vm27_vm4 = vcmask 851712   ;;  %vm33_vm5 = vcmask 786112  }
   0x9   :  { %s145_s0 = smov 8   ;;  %vm39_vm6 = vcmask 720512   ;;  %vm45_vm7 = vcmask 654912   ;;  %vm51_vm8 = vcmask 589312   ;;  %vm57_vm9 = vcmask 523712  }
   0xa   :  { %31 = vrot.lane.b32.xlu0 %v105_v4, %s135_s24  ;;  %37 = vrot.lane.b32.xlu1 %v106_v5, %s136_s25  ;;  %vm63_vm10 = vcmask 458112   ;;  %vm69_vm11 = vcmask 392512   ;;  %vm75_vm12 = vcmask 326912   ;;  %vm81_vm13 = vcmask 261312  }
   0xb   :  { %vm87_vm14 = vcmask 195712   ;;  %vm93_vm15 = vcmask 130112  }
   0xe   :  { %43 = vrot.lane.b32.xlu0 %v107_v7, %s137_s30  ;;  %49 = vrot.lane.b32.xlu1 %v108_v8, %s138_s2 }
  0x12   :  { %55 = vrot.lane.b32.xlu0 %v109_v9, %s139_s7  ;;  %61 = vrot.lane.b32.xlu1 %v110_v10, %s140_s8 }
  0x16   :  { %67 = vrot.lane.b32.xlu0 %v111_v11, %s141_s13  ;;  %73 = vrot.lane.b32.xlu1 %v112_v12, %s142_s14 }
  0x1a   :  { %79 = vrot.lane.b32.xlu0 %v113_v13, %s143_s19  ;;  %85 = vrot.lane.b32.xlu1 %v114_v14, %s144_s20 }
  0x1e   :  { %91 = vrot.lane.b32.xlu0 %v115_v15, %s145_s0 }
  0x74   :  { %v8_v16 = vpop.permute.xlu0 %7   ;;  %v20_v17 = vpop.permute.xlu1 %19  }
  0x75   :  { %10 = vst.msk [vmem:[#allocation0] sm:$0x1] %vm9_vm1, %v8_v16  }
  0x78   :  { %v14_v18 = vpop.permute.xlu0 %13   ;;  %v26_v19 = vpop.permute.xlu1 %25  }
  0x79   :  { %16 = vst.msk [vmem:[#allocation0] sm:$0x1] %vm15_vm2, %v14_v18  }
  0x7a   :  { %22 = vst.msk [vmem:[#allocation0] sm:$0x1] %vm21_vm3, %v20_v17  }
  0x7b   :  { %28 = vst.msk [vmem:[#allocation0] sm:$0x1] %vm27_vm4, %v26_v19  }
  0x7c   :  { %v32_v20 = vpop.permute.xlu0 %31   ;;  %v38_v21 = vpop.permute.xlu1 %37  }
  0x7d   :  { %34 = vst.msk [vmem:[#allocation0] sm:$0x1] %vm33_vm5, %v32_v20  }
  0x7e   :  { %40 = vst.msk [vmem:[#allocation0] sm:$0x1] %vm39_vm6, %v38_v21  }
  0x80   :  { %v44_v22 = vpop.permute.xlu0 %43   ;;  %v50_v23 = vpop.permute.xlu1 %49  }
  0x81   :  { %46 = vst.msk [vmem:[#allocation0] sm:$0x1] %vm45_vm7, %v44_v22  }
  0x82   :  { %52 = vst.msk [vmem:[#allocation0] sm:$0x1] %vm51_vm8, %v50_v23  }
  0x84   :  { %v56_v24 = vpop.permute.xlu0 %55   ;;  %v62_v25 = vpop.permute.xlu1 %61  }
  0x85   :  { %58 = vst.msk [vmem:[#allocation0] sm:$0x1] %vm57_vm9, %v56_v24  }
  0x86   :  { %64 = vst.msk [vmem:[#allocation0] sm:$0x1] %vm63_vm10, %v62_v25  }
  0x88   :  { %v68_v26 = vpop.permute.xlu0 %67   ;;  %v74_v27 = vpop.permute.xlu1 %73  }
  0x89   :  { %70 = vst.msk [vmem:[#allocation0] sm:$0x1] %vm69_vm11, %v68_v26  }
  0x8a   :  { %76 = vst.msk [vmem:[#allocation0] sm:$0x1] %vm75_vm12, %v74_v27  }
  0x8c   :  { %v80_v28 = vpop.permute.xlu0 %79   ;;  %v86_v29 = vpop.permute.xlu1 %85  }
  0x8d   :  { %82 = vst.msk [vmem:[#allocation0] sm:$0x1] %vm81_vm13, %v80_v28  }
  0x8e   :  { %88 = vst.msk [vmem:[#allocation0] sm:$0x1] %vm87_vm14, %v86_v29  }
  0x90   :  { %v92_v30 = vpop.permute.xlu0 %91  }
  0x91   :  { %94 = vst.msk [vmem:[#allocation0] sm:$0x1] %vm93_vm15, %v92_v30  }
  0x98   :  { %v98_v31 = vld [vmem:[#allocation0] sm:$0x1] }
  0x99   :  { %100 = vst [vmem:[%s208_s1] sm:$0x1] %v98_v31 }

// kernel: basic_block_forward.1
= control target key start
LH: loop header
LB: loop body
LE: loop exit
PB: predicated region body
PF: predicated region fallthrough
CT: control target
= control target key end

     0   :  { %s1338_s30 = smov 0   ;;  %s1723_s0 = inlined_call_operand.vmem [shape: f32[2,18,72], index: 0, kind: input, shape index: {}]   ;;  %s1724_s1 = inlined_call_operand.vmem [shape: f32[3,72,256], index: 1, kind: input, shape index: {}]   ;;  %s1725_s2 = inlined_call_operand.vmem [shape: f32[1,128], index: 2, kind: input, shape index: {}]   ;;  %s1726_s3 = inlined_call_operand.vmem [shape: f32[1,128], index: 3, kind: input, shape index: {}]   ;;  %s1727_s4 = inlined_call_operand.vmem [shape: f32[1,128], index: 4, kind: input, shape index: {}]   ;;  %s1728_s5 = inlined_call_operand.vmem [shape: f32[1,128], index: 5, kind: input, shape index: {}]   ;;  %s1729_s6 = inlined_call_operand.vmem [shape: f32[384,128], index: 6, kind: input, shape index: {}]   ;;  %s1730_s7 = inlined_call_operand.vmem [shape: f32[1,128], index: 7, kind: input, shape index: {}]   ;;  %s1731_s8 = inlined_call_operand.vmem [shape: f32[1,128], index: 8, kind: input, shape index: {}]   ;;  %s1732_s9 = inlined_call_operand.vmem [shape: f32[2,16,128], index: 9, kind: output, shape index: {}]  }
   0x1 LB: > { %s997_s10 = sadd.s32 4294967295, %s1285_s30   ;;  %p1001_p0 = scmp.ge.s32.totalorder %s1285_s30, 1  ;;  %s1285_s30 = sphi %s1338_s30, %s19_s30  }
   0x2   : > { %p287_p1 = scmp.lt.s32.totalorder %s1285_s30, 3 }
   0x4   : > { %p288_p2 = pnand %p1001_p0, %p287_p1 }
   0x5   : > { %v1006_v0 = vld [vmem:[%s1724_s1 + $0x98] sm:$0xff] (!%p288_p2)  ;;  %v1008_v1 = vld [vmem:[%s1724_s1 + $0xa8] sm:$0xff] (!%p288_p2)  ;;  %v1005_v2 = vld [vmem:[%s1724_s1 + $0x90] sm:$0xff] (!%p288_p2)  ;;  %p323_p3 = scmp.lt.s32.totalorder (!%p288_p2), %s997_s10, 1  ;;  %v1287_v7 = vmov (!%p288_p2), 0.0   ;;  %vm376_vm0 = vcmask (!%p288_p2), 1046528  }
   0x6   : > { %291 = sbr.rel (%p288_p2) target bundleno = 547 (0x223), region = 56  ;;  %v1149_v3 = vpack.c.bf16 (!%p288_p2), %v1008_v1, %v1006_v0  ;;  %v1007_v4 = vld [vmem:[%s1724_s1 + $0xa0] sm:$0xff] (!%p288_p2)  ;;  %v1010_v5 = vld [vmem:[%s1724_s1 + $0xb8] sm:$0xff] (!%p288_p2)  ;;  %v1012_v6 = vld [vmem:[%s1724_s1 + $0xc8] sm:$0xff] (!%p288_p2)  ;;  %451 = vmatprep.mubr.f32.mxu0 (!%p288_p2), %v1287_v7  ;;  %vm382_vm1 = vcmask (!%p288_p2), 588800   ;;  %vm564_vm2 = vcmask (!%p288_p2), 1045504  }
   0x7   : > { %v1151_v8 = vpack.c.bf16 (!%p288_p2), %v1007_v4, %v1005_v2  ;;  %v1153_v9 = vpack.c.bf16 (!%p288_p2), %v1012_v6, %v1010_v5  ;;  %v1009_v10 = vld [vmem:[%s1724_s1 + $0xb0] sm:$0xff] (!%p288_p2)  ;;  %v1011_v11 = vld [vmem:[%s1724_s1 + $0xc0] sm:$0xff] (!%p288_p2)  ;;  %v1014_v12 = vld [vmem:[%s1724_s1 + $0xd8] sm:$0xff] (!%p288_p2)  ;;  %vm695_vm3 = vcmask (!%p288_p2), 1040384  }
   0x8   : > { %1150 = vmatprep.subr.bf16.mxu0 (!%p288_p2), %v1149_v3  ;;  %v1016_v13 = vld [vmem:[%s1724_s1 + $0xe8] sm:$0xff] (!%p288_p2)  ;;  %v1155_v14 = vpack.c.bf16 (!%p288_p2), %v1011_v11, %v1009_v10  ;;  %v1013_v16 = vld [vmem:[%s1724_s1 + $0xd0] sm:$0xff] (!%p288_p2)  ;;  %v1015_v17 = vld [vmem:[%s1724_s1 + $0xe0] sm:$0xff] (!%p288_p2) }
   0x9   : > { %1152 = vmatpush1.bf16.msra.mxu0 (!%p288_p2), %v1151_v8  ;;  %v1157_v15 = vpack.c.bf16 (!%p288_p2), %v1016_v13, %v1014_v12  ;;  %v1018_v18 = vld [vmem:[%s1724_s1 + $0xf8] sm:$0xff] (!%p288_p2)  ;;  %v1020_v19 = vld [vmem:[%s1724_s1 + $0x108] sm:$0xff] (!%p288_p2)  ;;  %v1159_v20 = vpack.c.bf16 (!%p288_p2), %v1015_v17, %v1013_v16  ;;  %v1017_v22 = vld [vmem:[%s1724_s1 + $0xf0] sm:$0xff] (!%p288_p2) }
   0xa   : > { %1154 = vmatprep.subr.bf16.mxu0 (!%p288_p2), %v1153_v9  ;;  %v1161_v21 = vpack.c.bf16 (!%p288_p2), %v1020_v19, %v1018_v18  ;;  %v1019_v23 = vld [vmem:[%s1724_s1 + $0x100] sm:$0xff] (!%p288_p2)  ;;  %v1022_v27 = vld [vmem:[%s1724_s1 + $0x118] sm:$0xff] (!%p288_p2)  ;;  %v337_v28 = vld [vmem:[%s1724_s1 + $0x8] sm:$0xff] (!%p288_p2) }
   0xb   : > { %v1163_v26 = vpack.c.bf16 (!%p288_p2), %v1019_v23, %v1017_v22  ;;  %v339_v29 = vld [vmem:[%s1724_s1 + $0x18] sm:$0xff] (!%p288_p2)  ;;  %v336_v32 = vld [vmem:[%s1724_s1] sm:$0xff] (!%p288_p2)  ;;  %v338_v33 = vld [vmem:[%s1724_s1 + $0x10] sm:$0xff] (!%p288_p2) }
   0xc   : > { %v341_v35 = vld [vmem:[%s1724_s1 + $0x28] sm:$0xff] (!%p288_p2)  ;;  %v343_v36 = vld [vmem:[%s1724_s1 + $0x38] sm:$0xff] (!%p288_p2)  ;;  %v1021_v37 = vld [vmem:[%s1724_s1 + $0x110] sm:$0xff] (!%p288_p2)  ;;  %v1165_v38 = vpack.c.bf16 (!%p288_p2), %v339_v29, %v337_v28  ;;  %v1167_v40 = vpack.c.bf16 (!%p288_p2), %v338_v33, %v336_v32 }
   0xd   : > { %s1734_s10 = smov (!%p323_p3, %s997_s10), 1  ;;  %1156 = vmatpush1.bf16.msra.mxu0 %v1155_v14  ;;  %v340_v41 = vld [vmem:[%s1724_s1 + $0x20] sm:$0xff]  ;;  %v342_v42 = vld [vmem:[%s1724_s1 + $0x30] sm:$0xff]  ;;  %v345_v43 = vld [vmem:[%s1724_s1 + $0x48] sm:$0xff]  ;;  %v1169_v45 = vpack.c.bf16 %v343_v36, %v341_v35 }
   0xe   : > { %s1269_s12 = smul.u32 24, %s1734_s10  ;;  %1158 = vmatprep.subr.bf16.mxu0 %v1157_v15  ;;  %v347_v46 = vld [vmem:[%s1724_s1 + $0x58] sm:$0xff]  ;;  %v736_v47 = vld [vmem:[%s1729_s6 + $0x80] sm:$0xff]  ;;  %v737_v48 = vld [vmem:[%s1729_s6 + $0x88] sm:$0xff]  ;;  %v1171_v57 = vpack.c.bf16 %v342_v42, %v340_v41  ;;  %s1057_s22 = sshll.u32 %s1734_s10, 4 }
   0xf   : > { %v1197_v49 = vpack.c.bf16 %v737_v48, %v736_v47  ;;  %v720_v50 = vld [vmem:[%s1729_s6] sm:$0xff]  ;;  %v721_v51 = vld [vmem:[%s1729_s6 + $0x8] sm:$0xff]  ;;  %v738_v52 = vld [vmem:[%s1729_s6 + $0x90] sm:$0xff]  ;;  %v1173_v62 = vpack.c.bf16 %v347_v46, %v345_v43 }
  0x10   : > { %s327_s23 = scalar_lea.vmem %s1723_s0, %s1269_s12  ;;  %v1199_v53 = vpack.c.bf16 %v721_v51, %v720_v50  ;;  %v739_v54 = vld [vmem:[%s1729_s6 + $0x98] sm:$0xff]  ;;  %v722_v55 = vld [vmem:[%s1729_s6 + $0x10] sm:$0xff]  ;;  %v740_v60 = vld [vmem:[%s1729_s6 + $0xa0] sm:$0xff] }
  0x11   : > { %v1401_v24 = vld [vmem:[%s327_s23] sm:$0xff]  ;;  %v1403_v25 = vld [vmem:[%s327_s23 + $0x8] sm:$0xff]  ;;  %1160 = vmatpush1.bf16.msra.mxu0 %v1159_v20  ;;  %v1422_v34 = vld [vmem:[%s327_s23 + $0x10] sm:$0x3]  ;;  %v1201_v59 = vpack.c.bf16 %v739_v54, %v738_v52  ;;  %1198 = vmatprep.subr.bf16.mxu1 %v1197_v49  ;;  %s332_s23 = scalar_lea.vmem %s1732_s9, %s1057_s22 }
  0x12   : > { %1162 = vmatprep.subr.bf16.mxu0 %v1161_v21  ;;  %v377_v30 = vrot.slane %v1401_v24, 1  ;;  %v378_v31 = vrot.slane %v1403_v25, 1  ;;  %v380_v44 = vrot.slane %v1422_v34, 1  ;;  %v723_v56 = vld [vmem:[%s1729_s6 + $0x18] sm:$0xff]  ;;  %v741_v61 = vld [vmem:[%s1729_s6 + $0xa8] sm:$0xff]  ;;  %v344_v63 = vld [vmem:[%s1724_s1 + $0x40] sm:$0xff]  ;;  %1200 = vmatpush3.bf16.msra.mxu1 %v1199_v53 }
  0x13   : > { %v346_v0 = vld [vmem:[%s1724_s1 + $0x50] sm:$0xff]  ;;  %v349_v1 = vld [vmem:[%s1724_s1 + $0x68] sm:$0xff]  ;;  %v351_v2 = vld [vmem:[%s1724_s1 + $0x78] sm:$0xff]  ;;  %v1203_v3 = vpack.c.bf16 %v723_v56, %v722_v55  ;;  %1202 = vmatprep.subr.bf16.mxu1 %v1201_v59  ;;  %v1205_v4 = vpack.c.bf16 %v741_v61, %v740_v60  ;;  %v565_v49 = vrot.slane %v1401_v24, 2  ;;  %v566_v50 = vrot.slane %v1403_v25, 2 }
  0x14   : > { %v379_v39 = vsel %vm376_vm0, %v377_v30, %v378_v31  ;;  %v381_v58 = vsel %vm376_vm0, %v378_v31, %v380_v44  ;;  %v724_v5 = vld [vmem:[%s1729_s6 + $0x20] sm:$0xff]  ;;  %v725_v6 = vld [vmem:[%s1729_s6 + $0x28] sm:$0xff]  ;;  %v1175_v8 = vpack.c.bf16 %v346_v0, %v344_v63  ;;  %v742_v9 = vld [vmem:[%s1729_s6 + $0xb0] sm:$0xff]  ;;  %v1177_v11 = vpack.c.bf16 %v351_v2, %v349_v1 }
  0x15   : > { %1164 = vmatpush1.bf16.msra.mxu0 %v1163_v26  ;;  %v743_v10 = vld [vmem:[%s1729_s6 + $0xb8] sm:$0xff]  ;;  %v348_v12 = vld [vmem:[%s1724_s1 + $0x60] sm:$0xff]  ;;  %v350_v13 = vld [vmem:[%s1724_s1 + $0x70] sm:$0xff]  ;;  %v1207_v14 = vpack.c.bf16 %v725_v6, %v724_v5  ;;  %v567_v53 = vsel %vm564_vm2, %v565_v49, %v566_v50  ;;  %v568_v54 = vrot.slane %v1422_v34, 2 }
  0x16   : > { %403 = vmatprep.subr.mxu0 %v1022_v27  ;;  %1204 = vmatpush3.bf16.msra.mxu1 %v1203_v3  ;;  %v1209_v15 = vpack.c.bf16 %v743_v10, %v742_v9  ;;  %v726_v16 = vld [vmem:[%s1729_s6 + $0x30] sm:$0xff]  ;;  %v727_v17 = vld [vmem:[%s1729_s6 + $0x38] sm:$0xff]  ;;  %v1179_v18 = vpack.c.bf16 %v350_v13, %v348_v12  ;;  %v353_v19 = vld [vmem:[%s1724_s1 + $0x88] sm:$0xff] }
  0x17   : > { %1206 = vmatprep.subr.bf16.mxu1 %v1205_v4  ;;  %v1028_v20 = vld [vmem:[%s1724_s1 + $0x128] sm:$0xff]  ;;  %v1030_v21 = vld [vmem:[%s1724_s1 + $0x138] sm:$0xff]  ;;  %v1211_v22 = vpack.c.bf16 %v727_v17, %v726_v16  ;;  %v1027_v23 = vld [vmem:[%s1724_s1 + $0x120] sm:$0xff] }
  0x18   : > { %v1029_v26 = vld [vmem:[%s1724_s1 + $0x130] sm:$0xff]  ;;  %v1032_v27 = vld [vmem:[%s1724_s1 + $0x148] sm:$0xff]  ;;  %v1034_v28 = vld [vmem:[%s1724_s1 + $0x158] sm:$0xff]  ;;  %v1181_v30 = vpack.c.bf16 %v1030_v21, %v1028_v20 }
  0x19   : > { %404 = vmatpush1.msra.mxu0 %v1021_v37  ;;  %v352_v29 = vld [vmem:[%s1724_s1 + $0x80] sm:$0xff]  ;;  %v1183_v31 = vpack.c.bf16 %v1029_v26, %v1027_v23  ;;  %v1185_v32 = vpack.c.bf16 %v1034_v28, %v1032_v27  ;;  %v1033_v35 = vld [vmem:[%s1724_s1 + $0x150] sm:$0xff]  ;;  %v1036_v36 = vld [vmem:[%s1724_s1 + $0x168] sm:$0xff] }
  0x1a   : > { %1166 = vmatprep.subr.bf16.mxu0 %v1165_v38  ;;  %1023 = vmatmul.mubr.msk.f32.vlgmr.msra.gmra.mrb[0].mxu0 %vm382_vm1, %v379_v39  ;;  %v1031_v33 = vld [vmem:[%s1724_s1 + $0x140] sm:$0xff]  ;;  %v1038_v37 = vld [vmem:[%s1724_s1 + $0x178] sm:$0xff]  ;;  %v1037_v41 = vld [vmem:[%s1724_s1 + $0x170] sm:$0xff] }
  0x1b   : > { %1168 = vmatpush1.bf16.msra.mxu0 %v1167_v40  ;;  %457 = vmatprep.mubr.f32.mxu0 %v1287_v7  ;;  %v1187_v38 = vpack.c.bf16 %v1033_v35, %v1031_v33  ;;  %v1189_v39 = vpack.c.bf16 %v1038_v37, %v1036_v36  ;;  %v1035_v40 = vld [vmem:[%s1724_s1 + $0x160] sm:$0xff]  ;;  %v1040_v42 = vld [vmem:[%s1724_s1 + $0x188] sm:$0xff]  ;;  %v1042_v43 = vld [vmem:[%s1724_s1 + $0x198] sm:$0xff] }
  0x1c   : > { %1170 = vmatprep.subr.bf16.mxu0 %v1169_v45  ;;  %1208 = vmatpush3.bf16.msra.mxu1 %v1207_v14  ;;  %v1191_v44 = vpack.c.bf16 %v1037_v41, %v1035_v40  ;;  %v1193_v45 = vpack.c.bf16 %v1042_v43, %v1040_v42  ;;  %v1039_v46 = vld [vmem:[%s1724_s1 + $0x180] sm:$0xff]  ;;  %v1041_v47 = vld [vmem:[%s1724_s1 + $0x190] sm:$0xff]  ;;  %v1044_v51 = vld [vmem:[%s1724_s1 + $0x1a8] sm:$0xff] }
  0x1d   : > { %1210 = vmatprep.subr.bf16.mxu1 %v1209_v15  ;;  %v1195_v48 = vpack.c.bf16 %v1041_v47, %v1039_v46  ;;  %v1043_v52 = vld [vmem:[%s1724_s1 + $0x1a0] sm:$0xff]  ;;  %v745_v55 = vld [vmem:[%s1729_s6 + $0xc8] sm:$0xff]  ;;  %v747_v59 = vld [vmem:[%s1729_s6 + $0xd8] sm:$0xff] }
  0x1e   : > { %1024 = vmatmul.mubr.msk.f32.gmra.mrb[2].mxu0 %vm382_vm1, %v381_v58  ;;  %v728_v34 = vld [vmem:[%s1729_s6 + $0x40] sm:$0xff]  ;;  %v746_v58 = vld [vmem:[%s1729_s6 + $0xd0] sm:$0xff]  ;;  %v749_v1 = vld [vmem:[%s1729_s6 + $0xe8] sm:$0xff] }
  0x1f   : > { %1172 = vmatpush1.bf16.msra.mxu0 %v1171_v57  ;;  %532 = vmatprep.mubr.f32.mxu0 %v1287_v7  ;;  %v1217_v60 = vpack.c.bf16 %v747_v59, %v746_v58  ;;  %v730_v61 = vld [vmem:[%s1729_s6 + $0x50] sm:$0xff]  ;;  %v748_v0 = vld [vmem:[%s1729_s6 + $0xe0] sm:$0xff]  ;;  %v733_v4 = vld [vmem:[%s1729_s6 + $0x68] sm:$0xff] }
  0x20   : > { %1174 = vmatprep.subr.bf16.mxu0 %v1173_v62  ;;  %1212 = vmatpush3.bf16.msra.mxu1 %v1211_v22  ;;  %v731_v62 = vld [vmem:[%s1729_s6 + $0x58] sm:$0xff]  ;;  %v1221_v2 = vpack.c.bf16 %v749_v1, %v748_v0  ;;  %v732_v3 = vld [vmem:[%s1729_s6 + $0x60] sm:$0xff]  ;;  %v750_v6 = vld [vmem:[%s1729_s6 + $0xf0] sm:$0xff] }
  0x21   : > { %v1219_v63 = vpack.c.bf16 %v731_v62, %v730_v61  ;;  %v1223_v5 = vpack.c.bf16 %v733_v4, %v732_v3  ;;  %v734_v10 = vld [vmem:[%s1729_s6 + $0x70] sm:$0xff]  ;;  %v752_v13 = vld [vmem:[%s1729_s6 + $0x100] sm:$0xff]  ;;  %v753_v14 = vld [vmem:[%s1729_s6 + $0x108] sm:$0xff] }
  0x22   : > { %v1229_v15 = vpack.c.bf16 %v753_v14, %v752_v13  ;;  %v1047_v16 = vld [vmem:[%s1725_s2] ss:$0 sm:$0xff]  ;;  %v754_v33 = vld [vmem:[%s1729_s6 + $0x110] sm:$0xff]  ;;  %v755_v35 = vld [vmem:[%s1729_s6 + $0x118] sm:$0xff] }
  0x23   : > { %1176 = vmatpush1.bf16.msra.mxu0 %v1175_v8  ;;  %v751_v8 = vld [vmem:[%s1729_s6 + $0xf8] sm:$0xff]  ;;  %vm1051_vm4 = vmneg %vm695_vm3  ;;  %v756_v49 = vld [vmem:[%s1729_s6 + $0x120] sm:$0xff] }
  0x24   : > { %1178 = vmatprep.subr.bf16.mxu0 %v1177_v11  ;;  %v1225_v9 = vpack.c.bf16 %v751_v8, %v750_v6  ;;  %v735_v11 = vld [vmem:[%s1729_s6 + $0x78] sm:$0xff]  ;;  %v765_v58 = vld [vmem:[%s1729_s6 + $0x168] sm:$0xff]  ;;  %v1053_v8 = vld [vmem:[%s1730_s7] ss:$0 sm:$0xff] }
  0x25   : > { %v1227_v12 = vpack.c.bf16 %v735_v11, %v734_v10  ;;  %v767_v61 = vld [vmem:[%s1729_s6 + $0x178] sm:$0xff]  ;;  %v1054_v13 = vld [vmem:[%s1731_s8] ss:$0 sm:$0xff] }
  0x27   : > { %1180 = vmatpush1.bf16.msra.mxu0 %v1179_v18  ;;  %v1048_v18 = vld [vmem:[%s1726_s3] ss:$0 sm:$0xff] }
  0x28   : > { %484 = vmatprep.subr.mxu0 %v353_v19 }
  0x2b   : > { %485 = vmatpush1.msra.mxu0 %v352_v29 }
  0x2c   : > { %1182 = vmatprep.subr.bf16.mxu0 %v1181_v30  ;;  %1025 = vmatmul.mubr.msk.f32.vlgmr.msra.gmra.mrb[0].mxu0 %vm382_vm1, %v1401_v24  ;;  %v569_v24 = vsel %vm564_vm2, %v566_v50, %v568_v54  ;;  %v757_v50 = vld [vmem:[%s1729_s6 + $0x128] sm:$0xff] }
  0x2d   : > { %1184 = vmatpush1.bf16.msra.mxu0 %v1183_v31  ;;  %538 = vmatprep.mubr.f32.mxu0 %v1287_v7 }
  0x2e   : > { %1186 = vmatprep.subr.bf16.mxu0 %v1185_v32 }
  0x30   : > { %1026 = vmatmul.mubr.msk.f32.gmra.mrb[2].mxu0 %vm382_vm1, %v1403_v25  ;;  %v744_v25 = vld [vmem:[%s1729_s6 + $0xc0] sm:$0xff] }
  0x31   : > { %1188 = vmatpush1.bf16.msra.mxu0 %v1187_v38  ;;  %638 = vmatprep.mubr.f32.mxu0 %v1287_v7  ;;  %v1213_v56 = vpack.c.bf16 %v745_v55, %v744_v25  ;;  %v761_v25 = vld [vmem:[%s1729_s6 + $0x148] sm:$0xff] }
  0x32   : > { %1190 = vmatprep.subr.bf16.mxu0 %v1189_v39 }
  0x33   : > { %1214 = vmatprep.subr.bf16.mxu1 %v1213_v56  ;;  %v762_v56 = vld [vmem:[%s1729_s6 + $0x150] sm:$0xff] }
  0x35   : > { %1192 = vmatpush1.bf16.msra.mxu0 %v1191_v44  ;;  %v1233_v44 = vpack.c.bf16 %v755_v35, %v754_v33 }
  0x36   : > { %1194 = vmatprep.subr.bf16.mxu0 %v1193_v45 }
  0x39   : > { %1196 = vmatpush1.bf16.msra.mxu0 %v1195_v48 }
  0x3a   : > { %590 = vmatprep.subr.mxu0 %v1044_v51  ;;  %v1237_v51 = vpack.c.bf16 %v757_v50, %v756_v49 }
  0x3d   : > { %591 = vmatpush1.msra.mxu0 %v1043_v52  ;;  %v758_v52 = vld [vmem:[%s1729_s6 + $0x130] sm:$0xff] }
  0x3e   : > { %1045 = vmatmul.mubr.msk.f32.vlgmr.msra.gmra.mrb[0].mxu0 %vm382_vm1, %v567_v53  ;;  %v759_v53 = vld [vmem:[%s1729_s6 + $0x138] sm:$0xff] }
  0x3f   : > { %644 = vmatprep.mubr.f32.mxu0 %v1287_v7  ;;  %v729_v7 = vld [vmem:[%s1729_s6 + $0x48] sm:$0xff]  ;;  %v1241_v54 = vpack.c.bf16 %v759_v53, %v758_v52 }
  0x40   : > { %v1215_v57 = vpack.c.bf16 %v729_v7, %v728_v34  ;;  %v763_v34 = vld [vmem:[%s1729_s6 + $0x158] sm:$0xff] }
  0x41   : > { %v1249_v7 = vpack.c.bf16 %v763_v34, %v762_v56 }
  0x42   : > { %1046 = vmatmul.mubr.msk.f32.gmra.mrb[2].mxu0 %vm382_vm1, %v569_v24  ;;  %1216 = vmatpush3.bf16.msra.mxu1 %v1215_v57  ;;  %v760_v24 = vld [vmem:[%s1729_s6 + $0x140] sm:$0xff] }
  0x43   : > { %1218 = vmatprep.subr.bf16.mxu1 %v1217_v60  ;;  %v1245_v55 = vpack.c.bf16 %v761_v25, %v760_v24  ;;  %v764_v57 = vld [vmem:[%s1729_s6 + $0x160] sm:$0xff]  ;;  %v766_v60 = vld [vmem:[%s1729_s6 + $0x170] sm:$0xff] }
  0x44   : > { %v1253_v59 = vpack.c.bf16 %v765_v58, %v764_v57  ;;  %v1257_v62 = vpack.c.bf16 %v767_v61, %v766_v60 }
  0x46   : > { %1220 = vmatpush3.bf16.msra.mxu1 %v1219_v63 }
  0x47   : > { %1222 = vmatprep.subr.bf16.mxu1 %v1221_v2 }
  0x4a   : > { %1224 = vmatpush3.bf16.msra.mxu1 %v1223_v5  ;;  %v1049_v5 = vld [vmem:[%s1727_s4] ss:$0 sm:$0xff] }
  0x4b   : > { %1226 = vmatprep.subr.bf16.mxu1 %v1225_v9 }
  0x4e   : > { %1228 = vmatpush3.bf16.msra.mxu1 %v1227_v12 }
  0x4f   : > { %1230 = vmatprep.subr.bf16.mxu1 %v1229_v15 }
 0x111   : > { %v640_v17 = vpop.f32.mrb[0].mxu0 }
 0x112   : > { %v662_v19 = vmul.f32 %v1047_v16, %v640_v17  ;;  %v1652_v20 = vpop.f32.mrb[1].mxu0 }
 0x113   : > { %v682_v12 = vmul.f32 %v1049_v5, %v1652_v20 }
 0x114   : > { %v671_v21 = vadd.f32 %v1048_v18, %v662_v19 }
 0x115   : > { %v646_v22 = vpop.f32.mrb[2].mxu0 }
 0x116   : > { %v673_v23 = vmax.f32 %v671_v21, 0.0  ;;  %v663_v26 = vmul.f32 %v1047_v16, %v646_v22  ;;  %v1654_v27 = vpop.f32.mrb[3].mxu0 }
 0x117   : > { %v683_v9 = vmul.f32 %v1049_v5, %v1654_v27 }
 0x118   : > { %v696_v28 = vrot.slane %v673_v23, 7  ;;  %v672_v29 = vadd.f32 %v1048_v18, %v663_v26 }
 0x11a   : > { %v674_v30 = vmax.f32 %v672_v29, 0.0  ;;  %v702_v31 = vsel %vm695_vm3, 0.0, %v696_v28 }
 0x11b   : > { %v706_v38 = vrot.slane %v702_v31, 1  ;;  %v713_v39 = vrot.slane %v702_v31, 2 }
 0x11c   : > { %v697_v32 = vrot.slane %v674_v30, 7 }
 0x11e   : > { %v703_v36 = vsel %vm695_vm3, %v697_v32, 0.0  ;;  %v698_v37 = vsel %vm695_vm3, %v696_v28, %v697_v32 }
 0x11f   : > { %v716_v40 = vrot.slane %v703_v36, 2  ;;  %v707_v41 = vrot.slane %v698_v37, 1  ;;  %v709_v42 = vrot.slane %v703_v36, 1  ;;  %v714_v43 = vrot.slane %v698_v37, 2 }
 0x121   : > { %v708_v45 = vsel %vm376_vm0, %v706_v38, %v707_v41  ;;  %v710_v46 = vsel %vm376_vm0, %v707_v41, %v709_v42  ;;  %v715_v47 = vsel %vm564_vm2, %v713_v39, %v714_v43  ;;  %v717_v48 = vsel %vm564_vm2, %v714_v43, %v716_v40 }
 0x122   : > { %832 = vmatprep.mubr.f32.mxu1 %v708_v45 }
 0x123   : > { %1052 = vmatmul.mubr.msk.f32.vlgmr.msra.gmra.mrb[0].mxu1 %vm1051_vm4, %v696_v28 }
 0x124   : > { %1232 = vmatpush3.bf16.msra.mxu1 %v1229_v15  ;;  %837 = vmatprep.mubr.f32.mxu1 %v710_v46  ;;  %v1050_v15 = vld [vmem:[%s1728_s5] ss:$0 sm:$0xff] }
 0x125   : > { %1234 = vmatprep.subr.bf16.mxu1 %v1233_v44  ;;  %v692_v18 = vadd.f32 %v1050_v15, %v683_v9  ;;  %v691_v21 = vadd.f32 %v1050_v15, %v682_v12 }
 0x127   : > { %838 = vmatmul.mubr.f32.gmra.mrb[2].mxu1 %v698_v37 }
 0x128   : > { %1236 = vmatpush3.bf16.msra.mxu1 %v1233_v44  ;;  %1146 = vmatprep.mubr.f32.mxu1 %v715_v47 }
 0x129   : > { %1238 = vmatprep.subr.bf16.mxu1 %v1237_v51 }
 0x12c   : > { %1240 = vmatpush3.bf16.msra.mxu1 %v1237_v51 }
 0x12d   : > { %1242 = vmatprep.subr.bf16.mxu1 %v1241_v54 }
 0x130   : > { %1244 = vmatpush3.bf16.msra.mxu1 %v1241_v54 }
 0x131   : > { %1246 = vmatprep.subr.bf16.mxu1 %v1245_v55 }
 0x134   : > { %1248 = vmatpush3.bf16.msra.mxu1 %v1245_v55 }
 0x135   : > { %1250 = vmatprep.subr.bf16.mxu1 %v1249_v7 }
 0x138   : > { %1252 = vmatpush3.bf16.msra.mxu1 %v1249_v7 }
 0x139   : > { %1254 = vmatprep.subr.bf16.mxu1 %v1253_v59 }
 0x13c   : > { %1256 = vmatpush3.bf16.msra.mxu1 %v1253_v59 }
 0x13d   : > { %1258 = vmatprep.subr.bf16.mxu1 %v1257_v62 }
 0x140   : > { %1260 = vmatpush3.bf16.msra.mxu1 %v1257_v62 }
 0x143   : > { %1147 = vmatmul.mubr.f32.vlgmr.msra.gmra.mrb[4].mxu1 %v717_v48 }
 0x1f6   : > { %v1090_v63 = vpop.f32.mrb[0].mxu1 }
 0x1f7   : > { %v1091_v0 = vpop.f32.mrb[1].mxu1 }
 0x1f8   : > { %v1092_v1 = vadd.f32 %v1091_v0, %v1090_v63 }
 0x1fa   : > { %v1093_v2 = vpop.f32.mrb[2].mxu1 }
 0x1fb   : > { %v1094_v3 = vpop.f32.mrb[3].mxu1 }
 0x1fc   : > { %v1095_v4 = vadd.f32 %v1094_v3, %v1093_v2 }
 0x216   : > { %v1148_v6 = vpop.f32.mrb[4].mxu1 }
 0x217   : > { %v915_v10 = vadd.f32 %v1148_v6, %v1095_v4  ;;  %v909_v11 = vpop.f32.mrb[5].mxu1 }
 0x218   : > { %v910_v14 = vadd.f32 %v1092_v1, %v909_v11 }
 0x219   : > { %v926_v16 = vmul.f32 %v1053_v8, %v915_v10 }
 0x21a   : > { %v925_v17 = vmul.f32 %v1053_v8, %v910_v14 }
 0x21b   : > { %v935_v19 = vadd.f32 %v1054_v13, %v926_v16 }
 0x21c   : > { %v934_v22 = vadd.f32 %v1054_v13, %v925_v17 }
 0x21d   : > { %v937_v23 = vadd.f32 %v935_v19, %v692_v18 }
 0x21e   : > { %v936_v20 = vadd.f32 %v934_v22, %v691_v21 }
 0x21f   : > { %v939_v26 = vmax.f32 %v937_v23, 0.0 }
 0x220   : > { %v938_v27 = vmax.f32 %v936_v20, 0.0 }
 0x221   : > { %941 = vst [vmem:[%s332_s23 + $0x8] sm:$0xff] %v939_v26 }
 0x222   : > { %940 = vst [vmem:[%s332_s23] sm:$0xff] %v938_v27 }
 0x223 PF: > { %s19_s30 = sadd.s32 1, %s1285_s30  }
 0x224   : > { %p16_p4 = scmp.ge.s32.totalorder %s19_s30, 4  }
 0x226   :  { %18 = sbr.rel (!%p16_p4) target bundleno = 1 (0x1), region = 88 }

</bundles_post_ra>
